<compile_context>
chip_gen: v7x
topology: tpu7x:2x2x1
jax: 0.10.0
libtpu: 0.0.40
codegen_flags: <defaults>
</compile_context>

<pallas_src>
import functools
import math

import jax
import jax.numpy as jnp
from jax import lax
from jax.experimental import pallas as pl
from jax.experimental.pallas import tpu as pltpu

_LANE = 128


def _cdiv(a, b):
    return -(-a // b)


def _round_up(n, m):
    return _cdiv(n, m) * m


def _sublane_unit(dtype):
    # Native sublane packing: 8 rows for 4-byte, 16 for 2-byte, 32 for 1-byte.
    return max(8, 32 // max(jnp.dtype(dtype).itemsize, 1))


def _budget():
    """(per-input-buffer byte budget, vmem_limit_bytes) for the local chip."""
    try:
        kind = jax.devices()[0].device_kind.lower()
    except Exception:  # pragma: no cover - non-TPU fallback
        kind = ""
    if "v5" in kind:                    # v5e: 16 MiB scoped-VMEM default -> stay small
        return 4 * 1024 * 1024, None
    if "v7" in kind or "7x" in kind:    # v7x: ~2.3x HBM BW, 64 MiB VMEM -> bigger blocks
        return 8 * 1024 * 1024, 32 * 1024 * 1024
    return 4 * 1024 * 1024, None        # v6e / default


def _tree_sum(parts):
    """Balanced-tree sum of a static list of arrays (fewer serial dependencies)."""
    while len(parts) > 1:
        nxt = [parts[i] + parts[i + 1] for i in range(0, len(parts) - 1, 2)]
        if len(parts) % 2:
            nxt.append(parts[-1])
        parts = nxt
    return parts[0]


# -----------------------------------------------------------------------------
# Kernel A: mean over the trailing (lane) axis of a 2-D (rows, D) slab.
# -----------------------------------------------------------------------------
def _row_accumulate(x_ref, acc_ref, n_chunks, rem, group):
    """Add `n_chunks` full 128-lane chunks (+ a `rem`-lane static tail) of the
    current block into the lane-dense fp32 accumulator.  The accumulator is
    read/written once per `group` chunks (tree-sum within each group)."""
    n_groups, tail = divmod(n_chunks, group)
    if n_groups > 0:
        def body(g, carry):
            base = pl.multiple_of(g * (group * _LANE), _LANE)
            parts = [x_ref[:, pl.ds(base + c * _LANE, _LANE)].astype(jnp.float32)
                     for c in range(group)]
            acc_ref[...] += _tree_sum(parts)
            return carry
        lax.fori_loop(0, n_groups, body, 0)
    if tail > 0:
        base = n_groups * group * _LANE
        parts = [x_ref[:, base + c * _LANE: base + (c + 1) * _LANE].astype(jnp.float32)
                 for c in range(tail)]
        acc_ref[...] += _tree_sum(parts)
    if rem > 0:
        start = n_chunks * _LANE
        acc_ref[:, 0:rem] += x_ref[:, start:start + rem].astype(jnp.float32)


def _row_mean_kernel(x_ref, o_ref, acc_ref, *, inv_d, tiles_total,
                     chunks_main, chunks_last, rem_last, group):
    s = pl.program_id(0)               # reduction-split slot (parallel, for v7x)
    k = pl.program_id(2)               # D tile within this split (arbitrary, last)
    per = pl.num_programs(2)

    @pl.when(k == 0)
    def _():
        acc_ref[...] = jnp.zeros_like(acc_ref)

    tile = s * per + k                 # global D-tile index

    if chunks_main == chunks_last and rem_last == 0:
        # D divides the tile evenly: single uniform path.
        _row_accumulate(x_ref, acc_ref, chunks_main, 0, group)
    else:
        @pl.when(tile < tiles_total - 1)
        def _():
            _row_accumulate(x_ref, acc_ref, chunks_main, 0, group)

        @pl.when(tile == tiles_total - 1)   # globally-last (possibly ragged) tile
        def _():
            _row_accumulate(x_ref, acc_ref, chunks_last, rem_last, group)

    @pl.when(k == per - 1)
    def _():
        # Single cross-lane (XLU) reduce per reduction chain, epilogue only.
        row_sum = jnp.sum(acc_ref[...], axis=1, keepdims=True)      # (tr, 1)
        o_ref[...] = (row_sum * jnp.float32(inv_d)).astype(o_ref.dtype)


def _row_mean(x2d, *, block_bytes=None):
    """x2d: (rows, D) -> (rows,) mean over D."""
    rows, d = x2d.shape
    dtype = x2d.dtype
    if rows == 0:
        return jnp.zeros((0,), dtype=dtype)
    if d == 0:
        return jnp.full((rows,), jnp.nan, dtype=dtype)

    unit_r = _sublane_unit(dtype)
    chip_block, vmem_limit = _budget()
    if block_bytes is None:
        block_bytes = chip_block

    # Sublane packing: tiny row counts underfill the native (unit_r, 128) tile;
    # fold lanes into sublanes when D splits exactly, then average sub-means.
    if rows < unit_r:
        target = unit_r // rows
        for f in range(target, 1, -1):
            if d % f == 0 and d // f >= _LANE:
                sub = _row_mean(x2d.reshape(rows * f, d // f),
                                block_bytes=block_bytes)             # (rows*f,)
                return jnp.mean(sub.reshape(rows, f).astype(jnp.float32),
                                axis=1).astype(dtype)
        # fall through: no exact packing — proceed with the thin-row block.

    itemsize = jnp.dtype(dtype).itemsize

    # --- tile sizing: purely byte-budget driven (input block + fp32 acc) -----
    acc_row_bytes = _LANE * 4
    tr_cap = block_bytes // max(d * itemsize + acc_row_bytes, 1)
    if tr_cap >= rows:
        tr, tk = rows, d                       # whole problem in one lane tile
    elif tr_cap >= unit_r:
        tr, tk = (tr_cap // unit_r) * unit_r, d
    else:
        # D itself must be tiled along lanes.
        tr = rows if rows <= 4 * unit_r else 4 * unit_r
        tk = (block_bytes // max(tr * itemsize, 1)) // _LANE * _LANE
        tk = max(_LANE, min(tk, _round_up(d, _LANE)))

    n_row_tiles = _cdiv(rows, tr)
    nk = _cdiv(d, tk)

    # Split the reduction into two chains when the row axis alone cannot feed
    # both v7x TensorCores; harmless (one tiny wrapper add) on v5e/v6e.
    split = 2 if (n_row_tiles == 1 and nk >= 2 and nk % 2 == 0) else 1
    per = nk // split

    last_valid = d - (nk - 1) * tk             # valid lanes in the last D tile
    chunks_main = tk // _LANE
    chunks_last, rem_last = divmod(last_valid, _LANE)
    group = max(1, min(8, (512 * 1024) // max(tr * _LANE * 4, 1)))

    def x_index(s, i, k):
        return (i, s * per + k)

    def o_index(s, i, k):
        return (s, i, 0)

    out = pl.pallas_call(
        functools.partial(_row_mean_kernel, inv_d=1.0 / d, tiles_total=nk,
                          chunks_main=chunks_main, chunks_last=chunks_last,
                          rem_last=rem_last, group=group),
        out_shape=jax.ShapeDtypeStruct((split, rows, 1), dtype),
        grid_spec=pltpu.PrefetchScalarGridSpec(
            num_scalar_prefetch=0,
            grid=(split, n_row_tiles, per),
            in_specs=[pl.BlockSpec((tr, tk), x_index)],
            out_specs=pl.BlockSpec((None, tr, 1), o_index),
            scratch_shapes=[pltpu.VMEM((tr, _LANE), jnp.float32)],
        ),
        compiler_params=pltpu.CompilerParams(
            dimension_semantics=("parallel", "parallel", "arbitrary"),
            vmem_limit_bytes=vmem_limit,
        ),
    )(x2d)

    res = out[..., 0]                          # (split, rows)
    if split == 1:
        return res[0]
    return jnp.sum(res.astype(jnp.float32), axis=0).astype(dtype)


# -----------------------------------------------------------------------------
# Kernel B: mean over the middle axis of a 3-D (P, A, Q) slab (no transpose).
# -----------------------------------------------------------------------------
def _mid_accumulate(x_ref, acc_ref, unit, n_chunks, rem, group):
    n_groups, tail = divmod(n_chunks, group)
    if n_groups > 0:
        def body(g, carry):
            base = pl.multiple_of(g * (group * unit), unit)
            parts = [x_ref[pl.ds(base + c * unit, unit), :].astype(jnp.float32)
                     for c in range(group)]
            acc_ref[...] += _tree_sum(parts)
            return carry
        lax.fori_loop(0, n_groups, body, 0)
    if tail > 0:
        base = n_groups * group * unit
        parts = [x_ref[base + c * unit: base + (c + 1) * unit, :].astype(jnp.float32)
                 for c in range(tail)]
        acc_ref[...] += _tree_sum(parts)
    if rem > 0:
        start = n_chunks * unit
        acc_ref[0:rem, :] += x_ref[start:start + rem, :].astype(jnp.float32)


def _mid_mean_kernel(x_ref, o_ref, acc_ref, *, inv_a, unit, tiles_total,
                     chunks_main, chunks_last, rem_last, group):
    a = pl.program_id(2)

    @pl.when(a == 0)
    def _():
        acc_ref[...] = jnp.zeros_like(acc_ref)

    if chunks_main == chunks_last and rem_last == 0:
        _mid_accumulate(x_ref, acc_ref, unit, chunks_main, 0, group)
    else:
        @pl.when(a < tiles_total - 1)
        def _():
            _mid_accumulate(x_ref, acc_ref, unit, chunks_main, 0, group)

        @pl.when(a == tiles_total - 1)     # last (possibly ragged) A tile
        def _():
            _mid_accumulate(x_ref, acc_ref, unit, chunks_last, rem_last, group)

    @pl.when(a == pl.num_programs(2) - 1)
    def _():
        col_sum = jnp.sum(acc_ref[...], axis=0, keepdims=True)       # (1, tq)
        o_ref[...] = (col_sum * jnp.float32(inv_a)).astype(o_ref.dtype)


def _mid_mean(x3d, *, block_bytes=None):
    """x3d: (P, A, Q) -> (P, Q) mean over the middle axis A."""
    P, A, Q = x3d.shape
    dtype = x3d.dtype
    if P == 0 or Q == 0:
        return jnp.zeros((P, Q), dtype=dtype)
    if A == 0:
        return jnp.full((P, Q), jnp.nan, dtype=dtype)

    unit_a = _sublane_unit(dtype)
    chip_block, vmem_limit = _budget()
    if block_bytes is None:
        block_bytes = chip_block
    itemsize = jnp.dtype(dtype).itemsize

    # --- tile sizing: purely byte-budget driven (input block + fp32 acc) -----
    acc_full_q = unit_a * 4 * Q
    avail = max(block_bytes - acc_full_q, 0)
    ta_cap = avail // max(Q * itemsize, 1)
    if ta_cap >= A:
        ta, tq = A, Q
    elif ta_cap >= unit_a:
        ta, tq = (ta_cap // unit_a) * unit_a, Q
    else:
        # Q must be tiled along lanes.
        ta = A if A <= 4 * unit_a else 4 * unit_a
        tq = (block_bytes // max(ta * itemsize + unit_a * 4, 1)) // _LANE * _LANE
        tq = max(_LANE, min(tq, _round_up(Q, _LANE)))

    na = _cdiv(A, ta)
    nq = _cdiv(Q, tq)
    last_valid = A - (na - 1) * ta
    chunks_main = ta // unit_a
    chunks_last, rem_last = divmod(last_valid, unit_a)
    group = max(1, min(8, (512 * 1024) // max(unit_a * tq * 4, 1)))

    out = pl.pallas_call(
        functools.partial(_mid_mean_kernel, inv_a=1.0 / A, unit=unit_a,
                          tiles_total=na, chunks_main=chunks_main,
                          chunks_last=chunks_last, rem_last=rem_last,
                          group=group),
        out_shape=jax.ShapeDtypeStruct((P, 1, Q), dtype),
        grid_spec=pltpu.PrefetchScalarGridSpec(
            num_scalar_prefetch=0,
            grid=(P, nq, na),
            in_specs=[pl.BlockSpec((None, ta, tq), lambda p, q, a: (p, a, q))],
            out_specs=pl.BlockSpec((None, 1, tq), lambda p, q, a: (p, 0, q)),
            scratch_shapes=[pltpu.VMEM((unit_a, tq), jnp.float32)],
        ),
        compiler_params=pltpu.CompilerParams(
            dimension_semantics=("parallel", "parallel", "arbitrary"),
            vmem_limit_bytes=vmem_limit,
        ),
    )(x3d)
    return out[:, 0, :]


# -----------------------------------------------------------------------------
# MeanVector.forward equivalent.
# -----------------------------------------------------------------------------
def mean_vector(x, axis=-1):
    s = x.shape
    if axis < 0:
        if len(s) == 4:
            n = s[0]
            return _row_mean(x.reshape(n, s[1] * s[2] * s[3]))       # (N,)
        elif len(s) == 2:
            return _row_mean(x)                                      # (N,)
        else:
            # torch.mean(x, dim=0) — reduce the leading axis, no transpose.
            if len(s) == 1:
                return _row_mean(x.reshape(1, s[0])).reshape(())
            rest = s[1:]
            q = math.prod(rest)
            return _mid_mean(x.reshape(1, s[0], q)).reshape(rest)
    else:
        a = int(axis)
        pre, red, post = s[:a], s[a], s[a + 1:]
        p = math.prod(pre) if pre else 1
        q = math.prod(post) if post else 1
        if not post:
            # Trailing-axis reduction: contiguous reshape, no transpose.
            return _row_mean(x.reshape(p, red)).reshape(pre)
        # Leading/middle-axis reduction: contiguous reshape, no transpose.
        return _mid_mean(x.reshape(p, red, q)).reshape(pre + post)


if __name__ == "__main__":
    tol = dict(atol=1e-5, rtol=1e-5)

    # 4-D (NCHW) path: mean over C,H,W (uses sublane packing for small N).
    x4 = jax.random.normal(jax.random.PRNGKey(0), (2, 4, 16, 16), dtype=jnp.float32)
    y4 = jax.block_until_ready(mean_vector(x4))
    assert y4.shape == (2,), y4.shape
    assert jnp.allclose(y4, jnp.mean(x4, axis=(1, 2, 3)), **tol)

    # 2-D path with ragged rows and D (exercises in-kernel remainder handling).
    x2 = jax.random.normal(jax.random.PRNGKey(1), (5, 333), dtype=jnp.float32)
    y2 = jax.block_until_ready(mean_vector(x2))
    assert jnp.allclose(y2, jnp.mean(x2, axis=1), **tol)

    # bf16 path (dtype-aware sublane unit + packing).
    xb = jax.random.normal(jax.random.PRNGKey(2), (4, 512), dtype=jnp.bfloat16)
    yb = jax.block_until_ready(mean_vector(xb))
    assert jnp.allclose(yb.astype(jnp.float32),
                        jnp.mean(xb.astype(jnp.float32), axis=1),
                        atol=2e-2, rtol=2e-2)

    # axis >= 0 (middle axis) path, ragged A and Q.
    x3 = jax.random.normal(jax.random.PRNGKey(3), (4, 7, 33), dtype=jnp.float32)
    y3 = jax.block_until_ready(mean_vector(x3, axis=1))
    assert y3.shape == (4, 33), y3.shape
    assert jnp.allclose(y3, jnp.mean(x3, axis=1), **tol)

    # axis < 0, rank-3 path: mean over dim 0 via the middle-axis kernel.
    x3b = jax.random.normal(jax.random.PRNGKey(4), (5, 8, 16), dtype=jnp.float32)
    y3b = jax.block_until_ready(mean_vector(x3b))
    assert y3b.shape == (8, 16), y3b.shape
    assert jnp.allclose(y3b, jnp.mean(x3b, axis=0), **tol)

    # Force the tiled / split-reduction / ragged-last-tile paths with tiny
    # byte budgets (keeps test shapes small while covering the large-shape code).
    xr = jax.random.normal(jax.random.PRNGKey(5), (8, 8000), dtype=jnp.float32)
    yr = jax.block_until_ready(_row_mean(xr, block_bytes=64 * 1024))
    assert jnp.allclose(yr, jnp.mean(xr, axis=1), **tol)

    xm = jax.random.normal(jax.random.PRNGKey(6), (2, 40, 300), dtype=jnp.float32)
    ym = jax.block_until_ready(_mid_mean(xm, block_bytes=8 * 1024))
    assert jnp.allclose(ym, jnp.mean(xm, axis=1), **tol)

    print("KERNEL_OK")
</pallas_src>

<mosaic_0001>
module attributes {stable_mosaic.version = 11 : i64} {
  func.func @_row_mean_kernel(%arg0: i32, %arg1: i32, %arg2: i32, %arg3: memref<8x256xf32, #tpu.memory_space<vmem>>, %arg4: memref<1x8x1xf32, #tpu.memory_space<vmem>>, %arg5: memref<8x128xf32, #tpu.memory_space<vmem>>) attributes {dimension_semantics = [#tpu.dimension_semantics<parallel>, #tpu.dimension_semantics<parallel>, #tpu.dimension_semantics<arbitrary>], iteration_bounds = array<i64: 1, 1, 1>, scalar_prefetch = 0 : i64, scratch_operands = 1 : i64, tpu.core_type = #tpu.core_type<tc>, window_params = [{transform_indices = @transform_0, window_bounds = array<i64: 8, 256>}, {transform_indices = @transform_1, window_bounds = array<i64: 1, 8, 1>}]} {
    %c0_i32 = arith.constant 0 : i32
    %0 = arith.cmpi eq, %arg2, %c0_i32 : i32
    %1 = arith.extui %0 : i1 to i32
    %c0_i32_0 = arith.constant 0 : i32
    %2 = arith.cmpi ne, %1, %c0_i32_0 : i32
    scf.if %2 {
      %cst = arith.constant 0.000000e+00 : f32
      %12 = vector.broadcast %cst : f32 to vector<8x128xf32>
      %c0_9 = arith.constant 0 : index
      %c0_10 = arith.constant 0 : index
      %13 = vector.load %arg5[%c0_9, %c0_10] : memref<8x128xf32, #tpu.memory_space<vmem>>, vector<8x128xf32>
      tpu.vector_store %arg5[%c0_9, %c0_10], %12 {strides = array<i32>} : memref<8x128xf32, #tpu.memory_space<vmem>>, vector<8x128xf32>,
    } else {
    }
    %c0 = arith.constant 0 : index
    %c0_1 = arith.constant 0 : index
    %3 = vector.load %arg3[%c0, %c0_1] : memref<8x256xf32, #tpu.memory_space<vmem>>, vector<8x128xf32>
    %c0_2 = arith.constant 0 : index
    %c128 = arith.constant 128 : index
    %4 = vector.load %arg3[%c0_2, %c128] : memref<8x256xf32, #tpu.memory_space<vmem>>, vector<8x128xf32>
    %c0_3 = arith.constant 0 : index
    %c0_4 = arith.constant 0 : index
    %5 = vector.load %arg5[%c0_3, %c0_4] : memref<8x128xf32, #tpu.memory_space<vmem>>, vector<8x128xf32>
    %6 = arith.addf %3, %4 : vector<8x128xf32>
    %7 = arith.addf %5, %6 : vector<8x128xf32>
    %c0_5 = arith.constant 0 : index
    %c0_6 = arith.constant 0 : index
    %8 = vector.load %arg5[%c0_5, %c0_6] : memref<8x128xf32, #tpu.memory_space<vmem>>, vector<8x128xf32>
    tpu.vector_store %arg5[%c0_5, %c0_6], %7 {strides = array<i32>} : memref<8x128xf32, #tpu.memory_space<vmem>>, vector<8x128xf32>,
    %c0_i32_7 = arith.constant 0 : i32
    %9 = arith.cmpi eq, %arg2, %c0_i32_7 : i32
    %10 = arith.extui %9 : i1 to i32
    %c0_i32_8 = arith.constant 0 : i32
    %11 = arith.cmpi ne, %10, %c0_i32_8 : i32
    scf.if %11 {
      %c0_9 = arith.constant 0 : index
      %c0_10 = arith.constant 0 : index
      %12 = vector.load %arg5[%c0_9, %c0_10] : memref<8x128xf32, #tpu.memory_space<vmem>>, vector<8x128xf32>
      %cst = arith.constant dense<0.000000e+00> : vector<8xf32>
      %13 = vector.multi_reduction <add>, %12, %cst [1] : vector<8x128xf32> to vector<8xf32>
      %14 = vector.shape_cast %13 : vector<8xf32> to vector<8x1xf32>
      %cst_11 = arith.constant 3.906250e-03 : f32
      %15 = vector.broadcast %cst_11 : f32 to vector<8x1xf32>
      %16 = arith.mulf %14, %15 : vector<8x1xf32>
      %c0_12 = arith.constant 0 : index
      %c0_13 = arith.constant 0 : index
      %c0_14 = arith.constant 0 : index
      %17 = vector.load %arg4[%c0_12, %c0_13, %c0_14] : memref<1x8x1xf32, #tpu.memory_space<vmem>>, vector<1x8x1xf32>
      %18 = vector.shape_cast %17 : vector<1x8x1xf32> to vector<8x1xf32>
      %19 = vector.shape_cast %16 : vector<8x1xf32> to vector<1x8x1xf32>
      tpu.vector_store %arg4[%c0_12, %c0_13, %c0_14], %19 {strides = array<i32>} : memref<1x8x1xf32, #tpu.memory_space<vmem>>, vector<1x8x1xf32>,
    } else {
    }
    return
  }
  func.func @transform_0(%arg0: i32, %arg1: i32, %arg2: i32) -> (i32, i32) {
    %c1_i32 = arith.constant 1 : i32
    %0 = arith.muli %arg0, %c1_i32 : i32
    %1 = arith.addi %0, %arg2 : i32
    %c0_i32 = arith.constant 0 : i32
    return %arg1, %1 : i32, i32
  }
  func.func @transform_1(%arg0: i32, %arg1: i32, %arg2: i32) -> (i32, i32, i32) {
    %c0_i32 = arith.constant 0 : i32
    %c0_i32_0 = arith.constant 0 : i32
    return %arg0, %arg1, %c0_i32 : i32, i32, i32
  }
}

</mosaic_0001>

<bundles_post_ra>
// kernel: tpu_custom_call.1
= control target key start
LH: loop header
LB: loop body
LE: loop exit
PB: predicated region body
PF: predicated region fallthrough
CT: control target
= control target key end

     0   :  { %6 = vsyncpa [#allocation4], 0  ;;  %s76_s6 = smov [#allocation3]   ;;  %s102_s0 = inlined_call_operand.hbm [shape: f32[8,256], index: 0, kind: input, shape index: {}]   ;;  %s103_s1 = inlined_call_operand.vmem [shape: f32[1,8,1], index: 1, kind: output, shape index: {}]  }
   0x1   :  { %s17_s7 = sshll.u32 %s76_s6, 4  ;;  %s52_s10 = scalar_lea.hbm %s102_s0, 256  ;;  %s18_s7 = int_to_ptr.vmem [resolvable:$true] %s17_s7 }
   0x2   :  { %p53_p0 = scmp.ne.s32.totalorder %s102_s0, %s52_s10  ;;  %p56_p1 = scmp.lt.u32.totalorder %s52_s10, %s102_s0 }
   0x4   :  { %p58_p2 = pnand %p56_p1, %p53_p0 }
   0x6   :  { %61 = shalt.err (!%p58_p2)
}
   0x7   :  { %s62_s15 = scalar_lea.vmem %s18_s7, 256  ;;  %p67_p4 = scmp.lt.s32.totalorder %s18_s7, %s18_s7 }
   0x8   :  { %p63_p3 = scmp.ne.s32.totalorder %s18_s7, %s62_s15  ;;  %p68_p5 = scmp.lt.s32.totalorder %s62_s15, %s62_s15 }
   0xa   :  { %p69_p6 = por %p68_p5, %p67_p4 }
   0xc   :  { %p70_p7 = pnand %p69_p6, %p63_p3 }
   0xe   :  { %73 = shalt.err (!%p70_p7)
}
   0xf   :  { %20 = dma.hbm_to_vmem [thread:$0]  %s102_s0, 256, %s18_s7, [#allocation4]  }
  0x10   :  { %74 = dma.done.wait [#allocation4], 256  }
  0x11   :  { %75 = vsyncadd [#allocation4], 4294967040  ;;  %v31_v0 = vld [vmem:[#allocation3] sm:$0xff]  ;;  %v32_v1 = vld [vmem:[#allocation3 + $0x8] sm:$0xff]  ;;  %vm44_vm0 = vcmask 7168  }
  0x12   :  { %v34_v2 = vadd.f32 %v32_v1, %v31_v0 }
  0x14   :  { %41 = vadd.xlane.f32.xlu0 %v34_v2 }
  0xa1   :  { %v42_v3 = vpop.xlane.xlu0 %41 }
  0xa2   :  { %v43_v4 = vmul.f32 0.00390625, %v42_v3 }
  0xa4   :  { %45 = vst.msk [vmem:[%s103_s1] sm:$0xff] %vm44_vm0, %v43_v4 }
  0xa5   :  { %50 = vsyncpa [#allocation4], 1 }

</bundles_post_ra>
